<compile_context>
chip_gen: v5e
topology: v5e:2x2
jax: 0.10.0
libtpu: 0.0.40
codegen_flags: <defaults>
</compile_context>

<pallas_src>
import jax
import jax.numpy as jnp
from jax.experimental import pallas as pl
from jax.experimental.pallas import tpu as pltpu


def _make_fused_reducer_kernel(num_layers):
    """Kernel over one pixel tile; unrolls the full conv1x1+ReLU stack."""

    def kernel(*refs):
        x_ref = refs[0]
        o_ref = refs[-1]
        wb_refs = refs[1:-1]               # (w0, b0, w1, b1, ...)
        y = x_ref[...]                     # (Cin, TM), pixels on lanes
        for l in range(num_layers):
            w = wb_refs[2 * l][...]        # (Cout, Cin)
            b = wb_refs[2 * l + 1][...]    # (Cout, 1)
            y = jnp.dot(w, y,
                        preferred_element_type=jnp.float32,
                        precision=jax.lax.Precision.HIGHEST)
            y = jnp.maximum(y + b, 0.0)    # bias + ReLU, lane-dense in f32
        o_ref[...] = y.astype(o_ref.dtype)

    return kernel


def fused_reducer_cm(x_cm, params, *, tm=256):
    """Apply the fused 1x1-conv+ReLU stack to x_cm: (Cin, M) -> (Cout, M)."""
    C, M = x_cm.shape
    cout_final = params[-1][0].shape[0]

    # Lane-dense pixel tile: multiple of 128, clamped to the (rounded) pixel
    # count, then M padded up to a tile multiple so the hot path is unmasked.
    m_rounded = ((M + 127) // 128) * 128
    tm = min(tm, m_rounded)
    m_pad = ((M + tm - 1) // tm) * tm
    if m_pad != M:
        x_cm = jnp.pad(x_cm, ((0, 0), (0, m_pad - M)))

    in_specs = [pl.BlockSpec((C, tm), lambda i: (0, i))]
    args = [x_cm]
    for (w, b) in params:
        co, ci = w.shape
        in_specs.append(pl.BlockSpec((co, ci), lambda i: (0, 0)))  # resident W
        in_specs.append(pl.BlockSpec((co, 1), lambda i: (0, 0)))   # resident b
        args.append(w)
        args.append(b.reshape(co, 1))

    out = pl.pallas_call(
        _make_fused_reducer_kernel(len(params)),
        out_shape=jax.ShapeDtypeStruct((cout_final, m_pad), x_cm.dtype),
        grid_spec=pl.GridSpec(
            grid=(m_pad // tm,),
            in_specs=in_specs,
            out_specs=pl.BlockSpec((cout_final, tm), lambda i: (0, i)),
        ),
        compiler_params=pltpu.CompilerParams(
            dimension_semantics=("parallel",)),
    )(*args)
    return out[:, :M]


def init_encoding_reducer_params(reducer_layer_sizes, key):
    """Deterministic synthetic parameters for each 1x1 Conv2d layer.

    Layer i's PyTorch weight is (Cout, Cin, 1, 1); stored here as (Cout, Cin)
    ready for the channels-first matmul, plus bias (Cout,).
    """
    params = []
    for i in range(len(reducer_layer_sizes) - 1):
        cin, cout = reducer_layer_sizes[i], reducer_layer_sizes[i + 1]
        key, kw, kb = jax.random.split(key, 3)
        scale = 1.0 / jnp.sqrt(jnp.float32(cin))
        w = jax.random.uniform(kw, (cout, cin), jnp.float32, -scale, scale)
        b = jax.random.uniform(kb, (cout,), jnp.float32, -scale, scale)
        params.append((w, b))
    return params


def encoding_reducer_forward(enc_nchw, params, *, tm=256):
    """Forward pass of EncodingReducer.

    enc_nchw: (N, C, H, W) float32 — same as the PyTorch module's input.
    Returns (N, C_out, H, W) float32.
    """
    N, C, H, W = enc_nchw.shape
    # NCHW -> (C, N*H*W): only the small N/C axes are permuted; spatial dims
    # stay contiguous on the lane axis.
    x = jnp.transpose(enc_nchw, (1, 0, 2, 3)).reshape(C, N * H * W)
    y = fused_reducer_cm(x, params, tm=tm)
    cout = y.shape[0]
    return y.reshape(cout, N, H, W).transpose(1, 0, 2, 3)


if __name__ == "__main__":
    key = jax.random.PRNGKey(0)
    k_in, k_params = jax.random.split(key)

    # Small shapes consistent with the module: batch=2, C=4, spatial=16.
    reducer_layer_sizes = [4, 32, 8]
    enc = jax.random.normal(k_in, (2, 4, 16, 16), jnp.float32)

    params = init_encoding_reducer_params(reducer_layer_sizes, k_params)

    out = encoding_reducer_forward(enc, params)
    out = jax.block_until_ready(out)

    # Reference check in plain JAX (same math, same params, same precision).
    x_ref = jnp.transpose(enc, (1, 0, 2, 3)).reshape(enc.shape[1], -1)
    for (w, b) in params:
        x_ref = jnp.maximum(
            jnp.dot(w, x_ref, precision=jax.lax.Precision.HIGHEST) + b[:, None],
            0.0)
    ref = x_ref.reshape(reducer_layer_sizes[-1], 2, 16, 16).transpose(1, 0, 2, 3)

    assert out.shape == (2, reducer_layer_sizes[-1], 16, 16)
    assert jnp.allclose(out, ref, atol=1e-5, rtol=1e-5)

    print("KERNEL_OK")
</pallas_src>

<mosaic_0001>
module attributes {stable_mosaic.version = 11 : i64} {
  func.func @kernel(%arg0: i32, %arg1: memref<4x256xf32, #tpu.memory_space<vmem>>, %arg2: memref<32x4xf32, #tpu.memory_space<vmem>>, %arg3: memref<32x1xf32, #tpu.memory_space<vmem>>, %arg4: memref<8x32xf32, #tpu.memory_space<vmem>>, %arg5: memref<8x1xf32, #tpu.memory_space<vmem>>, %arg6: memref<8x256xf32, #tpu.memory_space<vmem>>) attributes {dimension_semantics = [#tpu.dimension_semantics<parallel>], iteration_bounds = array<i64: 2>, scalar_prefetch = 0 : i64, scratch_operands = 0 : i64, tpu.core_type = #tpu.core_type<tc>, window_params = [{transform_indices = @transform_0, window_bounds = array<i64: 4, 256>}, {pipeline_mode = #tpu.pipeline_mode<synchronous>, transform_indices = @transform_1, window_bounds = array<i64: 32, 4>}, {pipeline_mode = #tpu.pipeline_mode<synchronous>, transform_indices = @transform_2, window_bounds = array<i64: 32, 1>}, {pipeline_mode = #tpu.pipeline_mode<synchronous>, transform_indices = @transform_3, window_bounds = array<i64: 8, 32>}, {pipeline_mode = #tpu.pipeline_mode<synchronous>, transform_indices = @transform_4, window_bounds = array<i64: 8, 1>}, {transform_indices = @transform_5, window_bounds = array<i64: 8, 256>}]} {
    %c0 = arith.constant 0 : index
    %c0_0 = arith.constant 0 : index
    %0 = vector.load %arg1[%c0, %c0_0] : memref<4x256xf32, #tpu.memory_space<vmem>>, vector<4x256xf32>
    %c0_1 = arith.constant 0 : index
    %c0_2 = arith.constant 0 : index
    %1 = vector.load %arg2[%c0_1, %c0_2] : memref<32x4xf32, #tpu.memory_space<vmem>>, vector<32x4xf32>
    %c0_3 = arith.constant 0 : index
    %c0_4 = arith.constant 0 : index
    %2 = vector.load %arg3[%c0_3, %c0_4] : memref<32x1xf32, #tpu.memory_space<vmem>>, vector<32x1xf32>
    %cst = arith.constant dense<0.000000e+00> : vector<32x256xf32>
    %3 = tpu.matmul %1, %0, %cst {dimension_numbers = #tpu.dot_dimension_numbers<[1], [0], [0], [1], [0, 0, 1, 1], [], []>, precision = #tpu.contract_precision<fp32>} : vector<32x4xf32>, vector<4x256xf32>, vector<32x256xf32> -> vector<32x256xf32>
    %4 = vector.broadcast %2 : vector<32x1xf32> to vector<32x256xf32>
    %5 = arith.addf %3, %4 : vector<32x256xf32>
    %cst_5 = arith.constant 0.000000e+00 : f32
    %6 = vector.broadcast %cst_5 : f32 to vector<32x256xf32>
    %7 = arith.maximumf %5, %6 : vector<32x256xf32>
    %c0_6 = arith.constant 0 : index
    %c0_7 = arith.constant 0 : index
    %8 = vector.load %arg4[%c0_6, %c0_7] : memref<8x32xf32, #tpu.memory_space<vmem>>, vector<8x32xf32>
    %c0_8 = arith.constant 0 : index
    %c0_9 = arith.constant 0 : index
    %9 = vector.load %arg5[%c0_8, %c0_9] : memref<8x1xf32, #tpu.memory_space<vmem>>, vector<8x1xf32>
    %cst_10 = arith.constant dense<0.000000e+00> : vector<8x256xf32>
    %10 = tpu.matmul %8, %7, %cst_10 {dimension_numbers = #tpu.dot_dimension_numbers<[1], [0], [0], [1], [0, 0, 1, 1], [], []>, precision = #tpu.contract_precision<fp32>} : vector<8x32xf32>, vector<32x256xf32>, vector<8x256xf32> -> vector<8x256xf32>
    %11 = vector.broadcast %9 : vector<8x1xf32> to vector<8x256xf32>
    %12 = arith.addf %10, %11 : vector<8x256xf32>
    %cst_11 = arith.constant 0.000000e+00 : f32
    %13 = vector.broadcast %cst_11 : f32 to vector<8x256xf32>
    %14 = arith.maximumf %12, %13 : vector<8x256xf32>
    %c0_12 = arith.constant 0 : index
    %c0_13 = arith.constant 0 : index
    %15 = vector.load %arg6[%c0_12, %c0_13] : memref<8x256xf32, #tpu.memory_space<vmem>>, vector<8x256xf32>
    tpu.vector_store %arg6[%c0_12, %c0_13], %14 {strides = array<i32>} : memref<8x256xf32, #tpu.memory_space<vmem>>, vector<8x256xf32>,
    return
  }
  func.func @transform_0(%arg0: i32) -> (i32, i32) {
    %c0_i32 = arith.constant 0 : i32
    %c0_i32_0 = arith.constant 0 : i32
    return %c0_i32, %arg0 : i32, i32
  }
  func.func @transform_1(%arg0: i32) -> (i32, i32) {
    %c0_i32 = arith.constant 0 : i32
    %c0_i32_0 = arith.constant 0 : i32
    %c0_i32_1 = arith.constant 0 : i32
    return %c0_i32, %c0_i32_0 : i32, i32
  }
  func.func @transform_2(%arg0: i32) -> (i32, i32) {
    %c0_i32 = arith.constant 0 : i32
    %c0_i32_0 = arith.constant 0 : i32
    %c0_i32_1 = arith.constant 0 : i32
    return %c0_i32, %c0_i32_0 : i32, i32
  }
  func.func @transform_3(%arg0: i32) -> (i32, i32) {
    %c0_i32 = arith.constant 0 : i32
    %c0_i32_0 = arith.constant 0 : i32
    %c0_i32_1 = arith.constant 0 : i32
    return %c0_i32, %c0_i32_0 : i32, i32
  }
  func.func @transform_4(%arg0: i32) -> (i32, i32) {
    %c0_i32 = arith.constant 0 : i32
    %c0_i32_0 = arith.constant 0 : i32
    %c0_i32_1 = arith.constant 0 : i32
    return %c0_i32, %c0_i32_0 : i32, i32
  }
  func.func @transform_5(%arg0: i32) -> (i32, i32) {
    %c0_i32 = arith.constant 0 : i32
    %c0_i32_0 = arith.constant 0 : i32
    return %c0_i32, %arg0 : i32, i32
  }
}

</mosaic_0001>

<bundles_post_ra>
// kernel: tpu_custom_call.1
= control target key start
LH: loop header
LB: loop body
LE: loop exit
PB: predicated region body
PF: predicated region fallthrough
CT: control target
= control target key end

     0   :  { %10 = vsyncpa [#allocation3], 0  ;;  %s1633_s0 = inlined_call_operand.vmem [shape: f32[4,512], index: 0, kind: input, shape index: {}]   ;;  %s1634_s1 = inlined_call_operand.vmem [shape: f32[32,4], index: 1, kind: input, shape index: {}]   ;;  %s1635_s2 = inlined_call_operand.vmem [shape: f32[32,1], index: 2, kind: input, shape index: {}]   ;;  %s1636_s3 = inlined_call_operand.vmem [shape: f32[8,32], index: 3, kind: input, shape index: {}]   ;;  %s1637_s4 = inlined_call_operand.vmem [shape: f32[8,1], index: 4, kind: input, shape index: {}]   ;;  %s1638_s5 = inlined_call_operand.hbm [shape: f32[8,512], index: 5, kind: output, shape index: {}]  }
   0x1   :  { %12 = vsyncpa [#allocation3 + $0x1], 0  ;;  %s1375_s18 = smov 0   ;;  %s1377_s19 = smov 0  }
   0x2   :  { %s1379_s20 = smov 0   ;;  %s1381_s21 = smov 0  }
   0x3 LB: > { %s1396_s22 = sadd.s32 4294967295, %s1342_s21   ;;  %s1224_s23 = sadd.s32 4294967294, %s1342_s21   ;;  %s1342_s21 = sphi %s1381_s21, %s1644_s21   ;;  %s1338_s20 = sphi %s1379_s20, %s1643_s20   ;;  %s1334_s19 = sphi %s1377_s19, %s1642_s19   ;;  %s1330_s18 = sphi %s1375_s18, %s1641_s18  }
   0x4   : > { %s1400_s24 = sadd.s32 1, %s1342_s21   ;;  %s135_s25 = sadd.s32 1, %s1338_s20 }
   0x5   : > { %s132_s26 = ssub.s32 %s1342_s21, %s1400_s24  ;;  %p145_p0 = scmp.ne.s32.totalorder %s1338_s20, %s1334_s19 }
   0x6   : > { %p133_p1 = scmp.eq.s32.totalorder %s132_s26, 0  ;;  %p146_p2 = scmp.eq.s32.totalorder %s1396_s22, 1 }
   0x7   : > { %p151_p3 = scmp.ne.s32.totalorder %s1334_s19, %s1330_s18  ;;  %p152_p4 = scmp.eq.s32.totalorder %s1224_s23, 1 }
   0x8   : > { %s1411_s27 = scalar_select %p133_p1, %s1338_s20, %s135_s25  }
   0x9   : > { %p1413_p5 = por %p146_p2, %p145_p0  ;;  %p1417_p6 = por %p152_p4, %p151_p3 }
   0xa   : > { %p1227_p7 = scmp.ge.s32.totalorder %s1342_s21, 1  ;;  %p191_p8 = scmp.lt.s32.totalorder %s1342_s21, 3 }
   0xc   : > { %p192_p9 = pnand %p1227_p7, %p191_p8 }
   0xd   : > { %s1229_s30 = sshll.u32 (!%p192_p9), %s1396_s22, 1  ;;  %s216_s14 = sand.u32 (!%p192_p9), 1, %s1334_s19  }
   0xe   : > { %195 = sbr.rel (%p192_p9) target bundleno = 430 (0x1ae), region = 40  ;;  %p220_p10 = scmp.lt.s32.totalorder (!%p192_p9), %s1229_s30, 3 }
   0xf   : > { %s1236_s17 = sshll.u32 (!%p192_p9), %s1396_s22, 4  ;;  %s1149_s7 = scalar_lea.sflag (!%p192_p9), [#allocation3], %s216_s14 }
  0x10   : > { %s1160_s26 = scalar_lea.hbm (!%p192_p9), %s1638_s5, %s1236_s17  ;;  %s1300_s11 = scalar_lea.hbm (!%p192_p9), %s1638_s5, 32 }
  0x11   : > { %s1164_s6 = sshll.u32 (!%p192_p9), %s1160_s26, 4  ;;  %s1165_s6 = int_to_ptr.hbm [resolvable:$true] %s1164_s6 }
  0x12   : > { %s1294_s8 = sshra.s32 (!%p192_p9), %s1165_s6, 4  ;;  %s1295_s8 = int_to_ptr.hbm [resolvable:$true] %s1294_s8 }
  0x13   : > { %v227_v0 = vld [vmem:[%s1634_s1] sm:$0xff]  ;;  %vm259_vm0 = vcmask 31744   ;;  %v1344_v2 = vmov 0   ;;  %v232_v3 = vld [vmem:[%s1635_s2 + $0x8] sm:$0xff]  ;;  %s1646_s30 = smov (!%p220_p10, %s1229_s30), 3  ;;  %v229_v12 = vld [vmem:[%s1634_s1 + $0x10] sm:$0xff]  ;;  %p1301_p0 = scmp.lt.s32.totalorder %s1295_s8, %s1638_s5 }
  0x14   : > { %v261_v1 = vsel %vm259_vm0, %v227_v0, 0  ;;  %1278 = vset.pattern.permute.xlu1 %v1344_v2  ;;  %1277 = vset.pattern.permute.xlu0 %v1344_v2  ;;  %v228_v5 = vld [vmem:[%s1634_s1 + $0x8] sm:$0xff]  ;;  %s1230_s12 = sshll.u32 %s1646_s30, 2  ;;  %v231_v9 = vld [vmem:[%s1635_s2] sm:$0xff]  ;;  %v267_v13 = vsel %vm259_vm0, %v229_v12, 0  ;;  %v234_v16 = vld [vmem:[%s1635_s2 + $0x18] sm:$0xff] }
  0x15   : > { %v1431_v4 = vand.u32 4294901760, %v261_v1  ;;  %242 = vperm.xlu1 %1278, %v232_v3   ;;  %1279 = vset.pattern.permute.xlu2 %v1344_v2  ;;  %v264_v7 = vsel %vm259_vm0, %v228_v5, 0  ;;  %s223_s15 = scalar_lea.vmem %s1633_s0, %s1230_s12  ;;  %vm272_vm1 = vcmask 1043456   ;;  %v1463_v17 = vand.u32 4294901760, %v267_v13  ;;  %v230_v26 = vld [vmem:[%s1634_s1 + $0x18] sm:$0xff]  ;;  %v233_v31 = vld [vmem:[%s1635_s2 + $0x10] sm:$0xff] }
  0x16   : > { %v226_v8 = vld [vmem:[%s223_s15] sm:$0xff]  ;;  %v1449_v11 = vand.u32 4294901760, %v264_v7  ;;  %252 = vperm.xlu0 %1277, %v234_v16   ;;  %v270_v34 = vsel %vm259_vm0, %v230_v26, 0  ;;  %vm770_vm2 = vcmask 261120   ;;  %s1228_s15 = sshll.u32 %s216_s14, 4  ;;  %s1296_s22 = scalar_lea.hbm %s1295_s8, 16 }
  0x17   : > { %v1437_v6 = vsub.f32 %v261_v1, %v1431_v4  ;;  %256 = vst [vmem:[#allocation1] ss:$2 sm:$0xff] %v226_v8  ;;  %v1475_v30 = vsub.f32 %v267_v13, %v1463_v17  ;;  %v318_v39 = vand.u32 4294901760, %v270_v34  ;;  %s218_s16 = scalar_lea.vmem [#allocation2], %s1228_s15  ;;  %p1297_p11 = scmp.ne.s32.totalorder %s1295_s8, %s1296_s22 }
  0x18   : > { %v1458_v15 = vsub.f32 %v264_v7, %v1449_v11  ;;  %s1162_s30 = sshll.u32 %s218_s16, 4  ;;  %p1302_p1 = scmp.lt.s32.totalorder %s1300_s11, %s1296_s22  ;;  %s1163_s30 = int_to_ptr.vmem [resolvable:$true] %s1162_s30 }
  0x19   : > { %v1447_v10 = vand.u32 4294901760, %v1437_v6  ;;  %v312_v38 = vand.u32 4294901760, %v1475_v30  ;;  %v319_v43 = vsub.f32 %v270_v34, %v318_v39  ;;  %p1298_p12 = pnand %p1297_p11, %p1413_p5 }
  0x1a   : > { %v1466_v23 = vand.u32 4294901760, %v1458_v15  ;;  %p1303_p2 = por %p1302_p1, %p1301_p0 }
  0x1b   : > { %v297_v14 = vsub.f32 %v1437_v6, %v1447_v10  ;;  %v313_v42 = vsub.f32 %v1475_v30, %v312_v38  ;;  %v320_v45 = vand.u32 4294901760, %v319_v43  ;;  %p1299_p13 = pneg %p1298_p12 }
  0x1c   : > { %v305_v29 = vsub.f32 %v1458_v15, %v1466_v23 }
  0x1d   : > { %237 = vperm.xlu1 %1278, %v231_v9   ;;  %v298_v21 = vand.u32 4294901760, %v297_v14  ;;  %v314_v44 = vand.u32 4294901760, %v313_v42  ;;  %v321_v46 = vsub.f32 %v319_v43, %v320_v45  ;;  %p1304_p3 = pnand %p1303_p2, %p1299_p13 }
  0x1e   : > { %v257_v18 = vld.sshfl [vmem:[#allocation1] sm:$0xff pattern:$0x75316420]  ;;  %v258_v19 = vld.sshfl [vmem:[#allocation1 + $0x8] sm:$0xff pattern:$0x75316420]  ;;  %247 = vperm.xlu0 %1277, %v233_v31  }
  0x1f   : > { %v273_v20 = vsel %vm272_vm1, %v257_v18, 0  ;;  %v275_v22 = vsel %vm272_vm1, %v258_v19, 0  ;;  %v306_v37 = vand.u32 4294901760, %v305_v29  ;;  %v322_v47 = vand.u32 4294901760, %v321_v46 }
  0x20   : > { %v292_v24 = vand.u32 4294901760, %v273_v20  ;;  %v531_v25 = vand.u32 4294901760, %v275_v22 }
  0x22   : > { %293 = vmatpush.msra.mxu0 %v292_v24  ;;  %v343_v27 = vsub.f32 %v273_v20, %v292_v24  ;;  %420 = vmatpush.msra.mxu3 %v292_v24  ;;  %v582_v28 = vsub.f32 %v275_v22, %v531_v25 }
  0x23   : > { %299 = vmatmul.f32.vlgmr.msra.gmra.mxu0 %v298_v21  ;;  %424 = vmatmul.f32.vlgmr.msra.gmra.mxu3 %v1447_v10 }
  0x24   : > { %382 = vmatpush.msra.mxu2 %v343_v27  ;;  %v344_v32 = vand.u32 4294901760, %v343_v27  ;;  %v583_v33 = vand.u32 4294901760, %v582_v28 }
  0x25   : > { %385 = vmatmul.f32.vlgmr.msra.gmra.mxu2 %v1437_v6 }
  0x26   : > { %532 = vmatpush.msrb.mxu2 %v531_v25  ;;  %v345_v35 = vsub.f32 %v343_v27, %v344_v32  ;;  %464 = vmatpush.msrb.mxu0 %v344_v32  ;;  %v584_v36 = vsub.f32 %v582_v28, %v583_v33 }
  0x28   : > { %703 = vmatpush.msra.mxu2 %v583_v33  ;;  %621 = vmatpush.msra.mxu0 %v582_v28  ;;  %v346_v40 = vand.u32 4294901760, %v345_v35  ;;  %v585_v41 = vand.u32 4294901760, %v584_v36 }
  0x2a   : > { %347 = vmatpush.msra.mxu1 %v346_v40  ;;  %586 = vmatpush.msrb.mxu3 %v585_v41 }
  0x2b   : > { %307 = vmatmul.f32.gmra.mxu0 %v306_v37  ;;  %349 = vmatmul.f32.vlgmr.msra.gmra.mxu1 %v1431_v4 }
  0x2c   : > { %498 = vmatpush.msrb.mxu1 %v292_v24  ;;  %430 = vmatmul.f32.gmra.mxu3 %v1466_v23 }
  0x2d   : > { %390 = vmatmul.f32.gmra.mxu2 %v1458_v15  ;;  %737 = vmatpush.msra.mxu3 %v531_v25 }
  0x2e   : > { %659 = vmatpush.msra.mxu1 %v531_v25 }
  0x33   : > { %315 = vmatmul.f32.gmra.mxu0 %v314_v44  ;;  %353 = vmatmul.f32.gmra.mxu1 %v1449_v11 }
  0x34   : > { %436 = vmatmul.f32.gmra.mxu3 %v312_v38 }
  0x35   : > { %395 = vmatmul.f32.gmra.mxu2 %v1475_v30 }
  0x3b   : > { %323 = vmatmul.f32.gmra.mxu0 %v322_v47  ;;  %357 = vmatmul.f32.gmra.mxu1 %v1463_v17 }
  0x3c   : > { %442 = vmatmul.f32.gmra.mxu3 %v320_v45 }
  0x3d   : > { %400 = vmatmul.f32.gmra.mxu2 %v319_v43 }
  0x43   : > { %361 = vmatmul.f32.gmra.mxu1 %v318_v39  ;;  %466 = vmatmul.f32.vlgmr.msrb.gmra.mxu0 %v1431_v4 }
  0x44   : > { %588 = vmatmul.f32.vlgmr.msrb.gmra.mxu3 %v1431_v4 }
  0x45   : > { %538 = vmatmul.f32.vlgmr.msrb.gmra.mxu2 %v298_v21 }
  0x4b   : > { %470 = vmatmul.f32.gmra.mxu0 %v1449_v11  ;;  %500 = vmatmul.f32.vlgmr.msrb.gmra.mxu1 %v1431_v4 }
  0x4c   : > { %592 = vmatmul.f32.gmra.mxu3 %v1449_v11 }
  0x4d   : > { %546 = vmatmul.f32.gmra.mxu2 %v306_v37 }
  0x53   : > { %474 = vmatmul.f32.gmra.mxu0 %v1463_v17  ;;  %504 = vmatmul.f32.gmra.mxu1 %v1449_v11 }
  0x54   : > { %596 = vmatmul.f32.gmra.mxu3 %v1463_v17 }
  0x55   : > { %554 = vmatmul.f32.gmra.mxu2 %v314_v44 }
  0x5b   : > { %478 = vmatmul.f32.gmra.mxu0 %v318_v39  ;;  %508 = vmatmul.f32.gmra.mxu1 %v1463_v17 }
  0x5c   : > { %600 = vmatmul.f32.gmra.mxu3 %v318_v39 }
  0x5d   : > { %562 = vmatmul.f32.gmra.mxu2 %v322_v47 }
  0x63   : > { %512 = vmatmul.f32.gmra.mxu1 %v318_v39  ;;  %624 = vmatmul.f32.vlgmr.msra.gmra.mxu0 %v1437_v6 }
  0x64   : > { %739 = vmatmul.f32.vlgmr.msra.gmra.mxu3 %v1431_v4 }
  0x65   : > { %705 = vmatmul.f32.vlgmr.msra.gmra.mxu2 %v1431_v4 }
  0x6b   : > { %629 = vmatmul.f32.gmra.mxu0 %v1458_v15  ;;  %663 = vmatmul.f32.vlgmr.msra.gmra.mxu1 %v1447_v10 }
  0x6c   : > { %743 = vmatmul.f32.gmra.mxu3 %v1449_v11 }
  0x6d   : > { %709 = vmatmul.f32.gmra.mxu2 %v1449_v11 }
  0x73   : > { %634 = vmatmul.f32.gmra.mxu0 %v1475_v30  ;;  %669 = vmatmul.f32.gmra.mxu1 %v1466_v23 }
  0x74   : > { %747 = vmatmul.f32.gmra.mxu3 %v1463_v17 }
  0x75   : > { %713 = vmatmul.f32.gmra.mxu2 %v1463_v17 }
  0x7b   : > { %639 = vmatmul.f32.gmra.mxu0 %v319_v43  ;;  %675 = vmatmul.f32.gmra.mxu1 %v312_v38 }
  0x7c   : > { %751 = vmatmul.f32.gmra.mxu3 %v318_v39 }
  0x7d   : > { %717 = vmatmul.f32.gmra.mxu2 %v318_v39 }
  0x83   : > { %681 = vmatmul.f32.gmra.mxu1 %v320_v45 }
  0x87   : > { %v1512_v62 = vpop.permute.xlu1 %242 }
  0x88   : > { %v1510_v61 = vpop.permute.xlu0 %252 }
  0x8f   : > { %v1516_v4 = vpop.permute.xlu1 %237 }
  0x90   : > { %v1514_v3 = vpop.permute.xlu0 %247 }
  0xa0   : > { %v300_v48 = vpop.f32.mrf.mxu0 }
  0xa1   : > { %v301_v11 = vadd.f32 %v300_v48, %v1516_v4 }
  0xa6   : > { %v425_v49 = vpop.f32.mrf.mxu3 }
  0xa8   : > { %v308_v50 = vpop.f32.mrf.mxu0  ;;  %v350_v51 = vpop.f32.mrf.mxu1 }
  0xa9   : > { %v386_v52 = vpop.f32.mrf.mxu2  ;;  %v309_v8 = vadd.f32 %v308_v50, %v1512_v62  ;;  %v351_v14 = vadd.f32 %v350_v51, %v301_v11  ;;  %v763_v50 = vld [vmem:[%s1636_s3] sm:$0xff] }
  0xab   : > { %v387_v22 = vadd.f32 %v386_v52, %v351_v14 }
  0xad   : > { %v426_v26 = vadd.f32 %v425_v49, %v387_v22 }
  0xaf   : > { %v431_v53 = vpop.f32.mrf.mxu3 }
  0xb0   : > { %v316_v54 = vpop.f32.mrf.mxu0  ;;  %v354_v55 = vpop.f32.mrf.mxu1 }
  0xb1   : > { %v391_v56 = vpop.f32.mrf.mxu2  ;;  %v317_v9 = vadd.f32 %v316_v54, %v1514_v3  ;;  %v355_v12 = vadd.f32 %v354_v55, %v309_v8  ;;  %v772_v54 = vsel %vm770_vm2, %v763_v50, 0 }
  0xb2   : > { %v1548_v55 = vand.u32 4294901760, %v772_v54 }
  0xb3   : > { %v392_v18 = vadd.f32 %v391_v56, %v355_v12 }
  0xb5   : > { %v432_v23 = vadd.f32 %v431_v53, %v392_v18 }
  0xb7   : > { %v437_v57 = vpop.f32.mrf.mxu3 }
  0xb8   : > { %v324_v58 = vpop.f32.mrf.mxu0  ;;  %v358_v59 = vpop.f32.mrf.mxu1 }
  0xb9   : > { %v396_v60 = vpop.f32.mrf.mxu2  ;;  %v359_v13 = vadd.f32 %v358_v59, %v317_v9  ;;  %v325_v19 = vadd.f32 %v324_v58, %v1510_v61  ;;  %v1552_v58 = vsub.f32 %v772_v54, %v1548_v55 }
  0xbb   : > { %v397_v20 = vadd.f32 %v396_v60, %v359_v13 }
  0xbd   : > { %v438_v24 = vadd.f32 %v437_v57, %v397_v20 }
  0xbf   : > { %v443_v63 = vpop.f32.mrf.mxu3 }
  0xc0   : > { %v362_v0 = vpop.f32.mrf.mxu1  ;;  %v467_v1 = vpop.f32.mrf.mxu0 }
  0xc1   : > { %v401_v2 = vpop.f32.mrf.mxu2  ;;  %v363_v25 = vadd.f32 %v362_v0, %v325_v19  ;;  %v468_v33 = vadd.f32 %v467_v1, %v426_v26 }
  0xc3   : > { %v402_v32 = vadd.f32 %v401_v2, %v363_v25 }
  0xc5   : > { %v444_v39 = vadd.f32 %v443_v63, %v402_v32 }
  0xc7   : > { %v1518_v5 = vpop.f32.mrf.mxu3 }
  0xc8   : > { %v471_v6 = vpop.f32.mrf.mxu0  ;;  %v501_v7 = vpop.f32.mrf.mxu1 }
  0xc9   : > { %v1522_v10 = vpop.f32.mrf.mxu2  ;;  %v472_v27 = vadd.f32 %v471_v6, %v432_v23  ;;  %v502_v37 = vadd.f32 %v501_v7, %v468_v33  ;;  %v1558_v6 = vand.u32 4294901760, %v1552_v58 }
  0xca   : > { %v540_v20 = vadd.f32 %v1522_v10, %v1516_v4 }
  0xcb   : > { %v755_v41 = vmax.f32 %v502_v37, 0.0  ;;  %v797_v11 = vsub.f32 %v1552_v58, %v1558_v6 }
  0xcc   : > { %v590_v10 = vadd.f32 %v1518_v5, %v540_v20 }
  0xcd   : > { %v1545_v51 = vand.u32 4294901760, %v755_v41  ;;  %v1568_v19 = vand.u32 4294901760, %v797_v11 }
  0xcf   : > { %v1525_v15 = vpop.f32.mrf.mxu3  ;;  %v834_v59 = vsub.f32 %v755_v41, %v1545_v51 }
  0xd0   : > { %v475_v16 = vpop.f32.mrf.mxu0  ;;  %v505_v17 = vpop.f32.mrf.mxu1 }
  0xd1   : > { %v547_v21 = vpop.f32.mrf.mxu2  ;;  %v476_v28 = vadd.f32 %v475_v16, %v438_v24  ;;  %v506_v34 = vadd.f32 %v505_v17, %v472_v27  ;;  %v835_v14 = vand.u32 4294901760, %v834_v59 }
  0xd2   : > { %v548_v16 = vadd.f32 %v547_v21, %v1512_v62 }
  0xd3   : > { %v757_v40 = vmax.f32 %v506_v34, 0.0  ;;  %v836_v24 = vsub.f32 %v834_v59, %v835_v14 }
  0xd4   : > { %v594_v62 = vadd.f32 %v1525_v15, %v548_v16 }
  0xd5   : > { %v1538_v47 = vand.u32 4294901760, %v757_v40 }
  0xd7   : > { %v1528_v29 = vpop.f32.mrf.mxu3  ;;  %v828_v56 = vsub.f32 %v757_v40, %v1538_v47 }
  0xd8   : > { %v479_v30 = vpop.f32.mrf.mxu0  ;;  %v509_v31 = vpop.f32.mrf.mxu1 }
  0xd9   : > { %v510_v35 = vadd.f32 %v509_v31, %v476_v28  ;;  %v1530_v36 = vpop.f32.mrf.mxu2  ;;  %v480_v42 = vadd.f32 %v479_v30, %v444_v39  ;;  %v829_v9 = vand.u32 4294901760, %v828_v56  ;;  %v837_v30 = vand.u32 4294901760, %v836_v24 }
  0xda   : > { %v556_v21 = vadd.f32 %v1530_v36, %v1514_v3 }
  0xdb   : > { %v759_v38 = vmax.f32 %v510_v35, 0.0  ;;  %v830_v18 = vsub.f32 %v828_v56, %v829_v9 }
  0xdc   : > { %v598_v15 = vadd.f32 %v1528_v29, %v556_v21 }
  0xdd   : > { %v1532_v43 = vand.u32 4294901760, %v759_v38  ;;  %v831_v27 = vand.u32 4294901760, %v830_v18 }
  0xdf   : > { %v1534_v44 = vpop.f32.mrf.mxu3  ;;  %v822_v52 = vsub.f32 %v759_v38, %v1532_v43 }
  0xe0   : > { %v513_v45 = vpop.f32.mrf.mxu1  ;;  %v1536_v46 = vpop.f32.mrf.mxu0 }
  0xe1   : > { %v514_v48 = vadd.f32 %v513_v45, %v480_v42  ;;  %v1540_v49 = vpop.f32.mrf.mxu2  ;;  %v823_v0 = vand.u32 4294901760, %v822_v52  ;;  %v626_v31 = vadd.f32 %v1536_v46, %v590_v10 }
  0xe2   : > { %v564_v5 = vadd.f32 %v1540_v49, %v1510_v61 }
  0xe3   : > { %v761_v53 = vmax.f32 %v514_v48, 0.0  ;;  %v824_v13 = vsub.f32 %v822_v52, %v823_v0 }
  0xe4   : > { %v602_v41 = vadd.f32 %v1534_v44, %v564_v5  ;;  %v764_v44 = vld [vmem:[%s1637_s4] sm:$0xff] }
  0xe5   : > { %v786_v57 = vand.u32 4294901760, %v761_v53  ;;  %v825_v22 = vand.u32 4294901760, %v824_v13  ;;  %767 = vperm.xlu2 %1279, %v764_v44  }
  0xe7   : > { %v816_v60 = vsub.f32 %v761_v53, %v786_v57  ;;  %787 = vmatpush.msrb.mxu0 %v786_v57  ;;  %887 = vmatpush.msrb.mxu3 %v786_v57  ;;  %v1555_v63 = vpop.f32.mrf.mxu3 }
  0xe8   : > { %v630_v1 = vpop.f32.mrf.mxu0  ;;  %v664_v2 = vpop.f32.mrf.mxu1 }
  0xe9   : > { %v817_v7 = vand.u32 4294901760, %v816_v60  ;;  %789 = vmatpush.msrb.mxu0 %v1532_v43  ;;  %858 = vmatpush.msrb.mxu2 %v816_v60  ;;  %v706_v8 = vpop.f32.mrf.mxu2  ;;  %v631_v28 = vadd.f32 %v630_v1, %v594_v62  ;;  %v665_v32 = vadd.f32 %v664_v2, %v626_v31 }
  0xea   : > { %889 = vmatpush.msrb.mxu3 %v1532_v43 }
  0xeb   : > { %v818_v12 = vsub.f32 %v816_v60, %v817_v7  ;;  %791 = vmatpush.msrb.mxu0 %v1538_v47  ;;  %861 = vmatpush.msrb.mxu2 %v822_v52  ;;  %v707_v29 = vadd.f32 %v706_v8, %v665_v32 }
  0xec   : > { %891 = vmatpush.msrb.mxu3 %v1538_v47 }
  0xed   : > { %793 = vmatpush.msrb.mxu0 %v1545_v51  ;;  %864 = vmatpush.msrb.mxu2 %v828_v56  ;;  %v819_v17 = vand.u32 4294901760, %v818_v12  ;;  %v741_v45 = vadd.f32 %v1555_v63, %v707_v29 }
  0xee   : > { %893 = vmatpush.msrb.mxu3 %v1545_v51  ;;  %799 = vmatmul.f32.vlgmr.msrb.gmra.mxu0 %v1568_v19 }
  0xef   : > { %916 = vmatpush.msra.mxu0 %v817_v7  ;;  %820 = vmatpush.msrb.mxu1 %v819_v17  ;;  %v744_v23 = vpop.f32.mrf.mxu3  ;;  %v756_v53 = vmax.f32 %v741_v45, 0.0 }
  0xf0   : > { %867 = vmatpush.msrb.mxu2 %v834_v59  ;;  %v670_v25 = vpop.f32.mrf.mxu1  ;;  %v635_v4 = vpop.f32.mrf.mxu0  ;;  %897 = vmatmul.f32.vlgmr.msrb.gmra.mxu3 %v1558_v6 }
  0xf1   : > { %920 = vmatpush.msra.mxu0 %v823_v0  ;;  %870 = vmatmul.f32.vlgmr.msrb.gmra.mxu2 %v1552_v58  ;;  %v710_v26 = vpop.f32.mrf.mxu2  ;;  %v671_v3 = vadd.f32 %v670_v25, %v631_v28  ;;  %v636_v33 = vadd.f32 %v635_v4, %v598_v15  ;;  %v977_v59 = vand.u32 4294901760, %v756_v53 }
  0xf2   : > { %826 = vmatpush.msrb.mxu1 %v825_v22 }
  0xf3   : > { %924 = vmatpush.msra.mxu0 %v829_v9  ;;  %v711_v36 = vadd.f32 %v710_v26, %v671_v3  ;;  %v1019_v2 = vsub.f32 %v756_v53, %v977_v59 }
  0xf4   : > { %832 = vmatpush.msrb.mxu1 %v831_v27 }
  0xf5   : > { %928 = vmatpush.msra.mxu0 %v835_v14  ;;  %v745_v42 = vadd.f32 %v744_v23, %v711_v36  ;;  %v1020_v14 = vand.u32 4294901760, %v1019_v2 }
  0xf6   : > { %838 = vmatpush.msrb.mxu1 %v837_v30  ;;  %930 = vmatmul.f32.vlgmr.msra.gmra.mxu0 %v1548_v55 }
  0xf7   : > { %840 = vmatmul.f32.vlgmr.msrb.gmra.mxu1 %v1548_v55  ;;  %v748_v35 = vpop.f32.mrf.mxu3  ;;  %v758_v49 = vmax.f32 %v745_v42, 0.0  ;;  %v1021_v20 = vsub.f32 %v1019_v2, %v1020_v14 }
  0xf8   : > { %947 = vmatpush.msra.mxu1 %v786_v57  ;;  %v676_v34 = vpop.f32.mrf.mxu1  ;;  %v640_v40 = vpop.f32.mrf.mxu0 }
  0xf9   : > { %v677_v37 = vadd.f32 %v676_v34, %v636_v33  ;;  %v714_v38 = vpop.f32.mrf.mxu2  ;;  %v641_v46 = vadd.f32 %v640_v40, %v602_v41  ;;  %v1022_v23 = vand.u32 4294901760, %v1021_v20 }
  0xfa   : > { %949 = vmatpush.msra.mxu1 %v1532_v43 }
  0xfb   : > { %v715_v39 = vadd.f32 %v714_v38, %v677_v37 }
  0xfc   : > { %951 = vmatpush.msra.mxu1 %v1538_v47 }
  0xfd   : > { %v749_v43 = vadd.f32 %v748_v35, %v715_v39 }
  0xfe   : > { %953 = vmatpush.msra.mxu1 %v1545_v51  ;;  %v975_v51 = vand.u32 4294901760, %v758_v49 }
  0xff   : > { %v760_v61 = vmax.f32 %v749_v43, 0.0  ;;  %955 = vmatmul.f32.vlgmr.msra.gmra.mxu1 %v1548_v55  ;;  %v752_v47 = vpop.f32.mrf.mxu3 }
 0x100   : > { %v682_v48 = vpop.f32.mrf.mxu1  ;;  %v1013_v0 = vsub.f32 %v758_v49, %v975_v51 }
 0x101   : > { %v683_v50 = vadd.f32 %v682_v48, %v641_v46  ;;  %v718_v52 = vpop.f32.mrf.mxu2  ;;  %v973_v54 = vand.u32 4294901760, %v760_v61 }
 0x102   : > { %v1014_v11 = vand.u32 4294901760, %v1013_v0 }
 0x103   : > { %v719_v56 = vadd.f32 %v718_v52, %v683_v50  ;;  %v1007_v60 = vsub.f32 %v760_v61, %v973_v54 }
 0x104   : > { %v1015_v17 = vsub.f32 %v1013_v0, %v1014_v11 }
 0x105   : > { %v753_v57 = vadd.f32 %v752_v47, %v719_v56  ;;  %v1008_v8 = vand.u32 4294901760, %v1007_v60 }
 0x106   : > { %v1016_v22 = vand.u32 4294901760, %v1015_v17 }
 0x107   : > { %v762_v63 = vmax.f32 %v753_v57, 0.0  ;;  %v1009_v13 = vsub.f32 %v1007_v60, %v1008_v8 }
 0x109   : > { %v971_v1 = vand.u32 4294901760, %v762_v63  ;;  %v1010_v18 = vand.u32 4294901760, %v1009_v13 }
 0x10b   : > { %v1001_v7 = vsub.f32 %v762_v63, %v971_v1  ;;  %972 = vmatpush.msra.mxu2 %v971_v1  ;;  %1072 = vmatpush.msrb.mxu1 %v971_v1 }
 0x10d   : > { %v1002_v9 = vand.u32 4294901760, %v1001_v7  ;;  %974 = vmatpush.msra.mxu2 %v973_v54  ;;  %1043 = vmatpush.msrb.mxu0 %v1001_v7 }
 0x10e   : > { %1074 = vmatpush.msrb.mxu1 %v973_v54 }
 0x10f   : > { %v1003_v12 = vsub.f32 %v1001_v7, %v1002_v9  ;;  %976 = vmatpush.msra.mxu2 %v975_v51  ;;  %1046 = vmatpush.msrb.mxu0 %v1007_v60 }
 0x110   : > { %1076 = vmatpush.msrb.mxu1 %v975_v51 }
 0x111   : > { %978 = vmatpush.msra.mxu2 %v977_v59  ;;  %1049 = vmatpush.msrb.mxu0 %v1013_v0  ;;  %v1004_v16 = vand.u32 4294901760, %v1003_v12 }
 0x112   : > { %1078 = vmatpush.msrb.mxu1 %v977_v59  ;;  %984 = vmatmul.f32.vlgmr.msra.gmra.mxu2 %v1568_v19 }
 0x113   : > { %1101 = vmatpush.msrb.mxu2 %v1002_v9  ;;  %1005 = vmatpush.msra.mxu3 %v1004_v16 }
 0x114   : > { %1052 = vmatpush.msrb.mxu0 %v1019_v2  ;;  %1082 = vmatmul.f32.vlgmr.msrb.gmra.mxu1 %v1558_v6 }
 0x115   : > { %1105 = vmatpush.msrb.mxu2 %v1008_v8  ;;  %1055 = vmatmul.f32.vlgmr.msrb.gmra.mxu0 %v1552_v58 }
 0x116   : > { %1011 = vmatpush.msra.mxu3 %v1010_v18 }
 0x117   : > { %1109 = vmatpush.msrb.mxu2 %v1014_v11 }
 0x118   : > { %1017 = vmatpush.msra.mxu3 %v1016_v22 }
 0x119   : > { %1113 = vmatpush.msrb.mxu2 %v1020_v14 }
 0x11a   : > { %1023 = vmatpush.msra.mxu3 %v1022_v23  ;;  %1115 = vmatmul.f32.vlgmr.msrb.gmra.mxu2 %v1548_v55 }
 0x11b   : > { %1025 = vmatmul.f32.vlgmr.msra.gmra.mxu3 %v1548_v55 }
 0x11c   : > { %1132 = vmatpush.msrb.mxu3 %v971_v1 }
 0x11e   : > { %1134 = vmatpush.msrb.mxu3 %v973_v54 }
 0x120   : > { %1136 = vmatpush.msrb.mxu3 %v975_v51 }
 0x122   : > { %1138 = vmatpush.msrb.mxu3 %v977_v59 }
 0x123   : > { %1140 = vmatmul.f32.vlgmr.msrb.gmra.mxu3 %v1548_v55 }
 0x13f   : > { %v768_v58 = vpop.permute.xlu2 %767 }
 0x16b   : > { %v800_v19 = vpop.f32.mrf.mxu0 }
 0x16c   : > { %v801_v24 = vadd.f32 %v800_v19, %v768_v58 }
 0x173   : > { %v898_v21 = vpop.f32.mrf.mxu3  ;;  %v931_v27 = vpop.f32.mrf.mxu0 }
 0x174   : > { %v841_v25 = vpop.f32.mrf.mxu1  ;;  %v871_v6 = vpop.f32.mrf.mxu2 }
 0x175   : > { %v842_v62 = vadd.f32 %v841_v25, %v801_v24 }
 0x177   : > { %v872_v26 = vadd.f32 %v871_v6, %v842_v62 }
 0x179   : > { %v899_v4 = vadd.f32 %v898_v21, %v872_v26 }
 0x17b   : > { %v932_v10 = vadd.f32 %v931_v27, %v899_v4 }
 0x17c   : > { %v956_v28 = vpop.f32.mrf.mxu1 }
 0x17d   : > { %v957_v30 = vadd.f32 %v956_v28, %v932_v10 }
 0x17f   : > { %v1144_v15 = vmax.f32 %v957_v30, 0.0 }
 0x181   : > { %1146 = vst [vmem:[%s218_s16] sm:$0xff] %v1144_v15 }
 0x191   : > { %v1083_v34 = vpop.f32.mrf.mxu1 }
 0x192   : > { %v1056_v32 = vpop.f32.mrf.mxu0 }
 0x195   : > { %v985_v55 = vpop.f32.mrf.mxu2 }
 0x196   : > { %v986_v31 = vadd.f32 %v985_v55, %v768_v58 }
 0x19d   : > { %v1116_v5 = vpop.f32.mrf.mxu2 }
 0x19e   : > { %v1026_v3 = vpop.f32.mrf.mxu3 }
 0x19f   : > { %v1027_v33 = vadd.f32 %v1026_v3, %v986_v31 }
 0x1a1   : > { %v1057_v35 = vadd.f32 %v1056_v32, %v1027_v33 }
 0x1a3   : > { %v1084_v36 = vadd.f32 %v1083_v34, %v1057_v35 }
 0x1a5   : > { %v1117_v37 = vadd.f32 %v1116_v5, %v1084_v36 }
 0x1a6   : > { %v1141_v38 = vpop.f32.mrf.mxu3 }
 0x1a7   : > { %v1142_v29 = vadd.f32 %v1141_v38, %v1117_v37 }
 0x1a9   : > { %v1145_v39 = vmax.f32 %v1142_v29, 0.0 }
 0x1ab   : > { %1147 = vst [vmem:[%s218_s16 + $0x8] sm:$0xff] %v1145_v39 }
 0x1ac   : > { %1307 = shalt.err (!%p1304_p3)
}
 0x1ad   : > { %1237 = dma.vmem_to_hbm [thread:$0]  (%p1413_p5), %s1163_s30, 256, %s1165_s6, %s1149_s7  }
 0x1ae PF: > { %p1243_p4 = scmp.ge.s32.totalorder %s1342_s21, 2  ;;  %s1176_s14 = sand.u32 1, %s1330_s18  }
 0x1af   : > { %s1177_s15 = scalar_lea.sflag [#allocation3], %s1176_s14 }
 0x1b0   : > { %p1240_p7 = pnand %p1243_p4, %p1417_p6 }
 0x1b2   : > { %p1241_p8 = pneg %p1240_p7 }
 0x1b4   : > { %1325 = dma.done.wait (%p1241_p8), %s1177_s15, 256  }
 0x1b5   : > { %1327 = vsyncadd (%p1241_p8), %s1177_s15, 4294967040  ;;  %p15_p9 = scmp.ge.s32.totalorder %s1400_s24, 4   ;;  %s1641_s18 = smov %s1334_s19 }
 0x1b6   : > { %s1642_s19 = smov %s1338_s20  ;;  %s1643_s20 = smov %s1411_s27 }
 0x1b7   : > { %s1644_s21 = smov %s1400_s24  ;;  %17 = sbr.rel (!%p15_p9) target bundleno = 3 (0x3), region = 75 }
 0x1bc   :  { %1183 = vsyncpa [#allocation3], 1 }
 0x1bd   :  { %1185 = vsyncpa [#allocation3 + $0x1], 1 }

</bundles_post_ra>
